<compile_context>
chip_gen: v6e
topology: v6e:2x2x1
jax: 0.10.0
libtpu: 0.0.40
codegen_flags: <defaults>
</compile_context>

<pallas_src>
import functools

import numpy as np
import jax
import jax.numpy as jnp
from jax.experimental import pallas as pl
from jax.experimental.pallas import tpu as pltpu


def _round_up(x, m):
    return (x + m - 1) // m * m


def _compute_r_indices(H, W, num_angle, num_rho):
    """Rho bin index per (angle, pixel); -1 marks dropped (out-of-range) bins."""
    irho = float(int(np.sqrt(H * H + W * W) + 1)) / float(num_rho - 1)
    itheta = np.pi / num_angle
    angles = np.arange(num_angle, dtype=np.float64) * itheta
    tab_cos = np.cos(angles) / irho                       # (A,)
    tab_sin = np.sin(angles) / irho                       # (A,)

    ys, xs = np.meshgrid(np.arange(H), np.arange(W), indexing="ij")
    xx = (xs - W // 2).reshape(-1).astype(np.float64)     # (HW,)
    yy = (ys - H // 2).reshape(-1).astype(np.float64)     # (HW,)

    v = tab_cos[:, None] * xx[None, :] + tab_sin[:, None] * yy[None, :]   # (A, HW)
    # std::round -> round half away from zero
    r = np.trunc(v + np.where(v >= 0.0, 0.5, -0.5)).astype(np.int64) + num_rho // 2
    r = np.where((r >= 0) & (r < num_rho), r, -1)
    return r.astype(np.int32)                             # (A, HW)


@functools.lru_cache(maxsize=None)
def _hough_index_table_np(H, W, num_angle, num_rho, a_pad, hw_pad):
    """Host (numpy) int32 table (a_pad, hw_pad); padding carries the -1 sentinel.

    Cached as numpy (not a device array) so no HBM is pinned per shape combo
    and the table follows whatever device / jit context the caller uses.
    """
    r = _compute_r_indices(H, W, num_angle, num_rho)      # (A, HW)
    tab = np.full((a_pad, hw_pad), -1, dtype=np.int32)
    tab[:num_angle, : H * W] = r
    return tab


def _dht_kernel(feat_ref, rtab_ref, o_ref):
    # feat_ref: (tile_nc, tile_k)        f32 / bf16
    # rtab_ref: (ta, tile_k)             i32  (rho index per pixel, per angle)
    # o_ref:    (tile_nc, ta * r_pad)    f32  (resident across k -> accumulator)
    k = pl.program_id(2)

    @pl.when(k == 0)
    def _init():
        o_ref[...] = jnp.zeros_like(o_ref)

    ta, tile_k = rtab_ref.shape
    r_pad = o_ref.shape[1] // ta
    dt = feat_ref.dtype

    # Single iota shared by all TA angle comparisons (VALU saving); each
    # compare is a cheap sublane-broadcast of one table row.  One-hot values
    # (0/1) are exact in either f32 or bf16.
    rho = jax.lax.broadcasted_iota(jnp.int32, (r_pad, tile_k), 0)
    onehot_t = jnp.concatenate(
        [(rho == rtab_ref[a:a + 1, :]).astype(dt) for a in range(ta)], axis=0)

    # out[m, a*r_pad + rho] += sum_p feat[m, p] * onehot_t[a*r_pad + rho, p]
    # Single wide MXU dot (N = ta*r_pad), f32 accumulation.
    o_ref[...] += jax.lax.dot_general(
        feat_ref[...], onehot_t,
        dimension_numbers=(((1,), (1,)), ((), ())),
        preferred_element_type=jnp.float32)


def c_dht_forward(feat, num_angle, num_rho, *, angle_block=8, tile_k_cap=512,
                  tile_nc_cap=512, use_bf16=False):
    """Pallas implementation of C_dht(numAngle, numRho).forward(feat)."""
    feat = feat.astype(jnp.float32)    # torch.cuda.amp.custom_fwd(cast_inputs=float32)
    N, C, H, W = feat.shape
    NC, HW = N * C, H * W

    r_pad = _round_up(num_rho, 128)            # lane-dense rho columns

    ta = max(8, _round_up(angle_block, 8))     # angles per grid step (sublane-aligned)
    a_blocks = pl.cdiv(num_angle, ta)
    a_pad = a_blocks * ta

    # Pad HW only up to the next multiple of 128, distributed over k tiles
    # (no full-tile zero padding).
    tile_k_cap = _round_up(tile_k_cap, 128)
    hw128 = _round_up(HW, 128)
    if hw128 <= tile_k_cap:
        tile_k, num_k = hw128, 1
    else:
        num_k = pl.cdiv(hw128, tile_k_cap)
        tile_k = _round_up(pl.cdiv(hw128, num_k), 128)
    hw_pad = tile_k * num_k

    # NC tiling so large N*C stays within v7x's smaller VMEM.
    tile_nc = min(_round_up(NC, 8), _round_up(tile_nc_cap, 8))
    nc_blocks = pl.cdiv(NC, tile_nc)
    nc_pad = tile_nc * nc_blocks

    feat2d = feat.reshape(NC, HW)
    if use_bf16:
        feat2d = feat2d.astype(jnp.bfloat16)
    if nc_pad != NC or hw_pad != HW:
        feat2d = jnp.pad(feat2d, ((0, nc_pad - NC), (0, hw_pad - HW)))

    rtab = jnp.asarray(_hough_index_table_np(H, W, num_angle, num_rho, a_pad, hw_pad))

    feat_bytes = 2 if use_bf16 else 4
    cost = pl.CostEstimate(
        flops=2 * nc_pad * hw_pad * a_pad * r_pad,
        transcendentals=0,
        bytes_accessed=(a_blocks * nc_pad * hw_pad * feat_bytes   # feat, re-read per angle block
                        + nc_blocks * a_pad * hw_pad * 4          # index table, re-read per NC block
                        + nc_pad * a_pad * r_pad * 4))            # output

    # Explicit VMEM budget: double-buffered blocks + the one-hot intermediate.
    vmem_bytes = (2 * tile_nc * tile_k * feat_bytes
                  + 2 * ta * tile_k * 4
                  + 2 * tile_nc * ta * r_pad * 4
                  + ta * r_pad * tile_k * feat_bytes)
    vmem_limit = int(min(max(2 * vmem_bytes + (2 << 20), 16 << 20), 48 << 20))

    out2d = pl.pallas_call(
        _dht_kernel,
        out_shape=jax.ShapeDtypeStruct((nc_pad, a_pad * r_pad), jnp.float32),
        grid_spec=pltpu.PrefetchScalarGridSpec(
            num_scalar_prefetch=0,
            grid=(nc_blocks, a_blocks, num_k),
            in_specs=[
                pl.BlockSpec((tile_nc, tile_k), lambda n, a, k: (n, k)),
                pl.BlockSpec((ta, tile_k), lambda n, a, k: (a, k)),
            ],
            out_specs=pl.BlockSpec((tile_nc, ta * r_pad), lambda n, a, k: (n, a)),
        ),
        compiler_params=pltpu.CompilerParams(
            dimension_semantics=("parallel", "parallel", "arbitrary"),
            vmem_limit_bytes=vmem_limit),
        cost_estimate=cost,
    )(feat2d, rtab)

    # (nc_pad, a_pad*r_pad) -> (N, C, numAngle, numRho); slice only when padded.
    out = out2d.reshape(nc_pad, a_pad, r_pad)
    if nc_pad != NC:
        out = out[:NC]
    if a_pad != num_angle:
        out = out[:, :num_angle]
    if r_pad != num_rho:
        out = out[:, :, :num_rho]
    return out.reshape(N, C, num_angle, num_rho)


if __name__ == "__main__":
    # Small, deterministic example consistent with the module's forward.
    N, C, H, W = 2, 4, 16, 16
    num_angle, num_rho = 8, 32

    key = jax.random.PRNGKey(0)
    feat = jax.random.normal(key, (N, C, H, W), dtype=jnp.float32)

    out = jax.block_until_ready(c_dht_forward(feat, num_angle, num_rho))
    assert out.shape == (N, C, num_angle, num_rho)

    # Pure-numpy reference with identical scatter-add semantics.
    feat_np = np.asarray(feat).reshape(N * C, H * W)
    r_idx = _compute_r_indices(H, W, num_angle, num_rho)          # (A, HW)
    ref = np.zeros((N * C, num_angle, num_rho), np.float32)
    for a in range(num_angle):
        valid = r_idx[a] >= 0
        oh = np.zeros((H * W, num_rho), np.float32)
        oh[np.nonzero(valid)[0], r_idx[a][valid]] = 1.0
        ref[:, a, :] = feat_np @ oh
    ref = ref.reshape(N, C, num_angle, num_rho)

    np.testing.assert_allclose(np.asarray(out), ref, rtol=1e-4, atol=1e-4)
    print("KERNEL_OK")
</pallas_src>

<mosaic_0001>
module attributes {stable_mosaic.version = 11 : i64} {
  func.func @_dht_kernel(%arg0: i32, %arg1: i32, %arg2: i32, %arg3: memref<8x256xf32, #tpu.memory_space<vmem>>, %arg4: memref<8x256xi32, #tpu.memory_space<vmem>>, %arg5: memref<8x1024xf32, #tpu.memory_space<vmem>>) attributes {dimension_semantics = [#tpu.dimension_semantics<parallel>, #tpu.dimension_semantics<parallel>, #tpu.dimension_semantics<arbitrary>], iteration_bounds = array<i64: 1, 1, 1>, scalar_prefetch = 0 : i64, scratch_operands = 0 : i64, tpu.core_type = #tpu.core_type<tc>, window_params = [{transform_indices = @transform_0, window_bounds = array<i64: 8, 256>}, {transform_indices = @transform_1, window_bounds = array<i64: 8, 256>}, {transform_indices = @transform_2, window_bounds = array<i64: 8, 1024>}]} {
    %c0_i32 = arith.constant 0 : i32
    %0 = arith.cmpi eq, %arg2, %c0_i32 : i32
    %1 = arith.extui %0 : i1 to i32
    %c0_i32_0 = arith.constant 0 : i32
    %2 = arith.cmpi ne, %1, %c0_i32_0 : i32
    scf.if %2 {
      %cst_15 = arith.constant 0.000000e+00 : f32
      %50 = vector.broadcast %cst_15 : f32 to vector<8x1024xf32>
      %c0_16 = arith.constant 0 : index
      %c0_17 = arith.constant 0 : index
      %51 = vector.load %arg5[%c0_16, %c0_17] : memref<8x1024xf32, #tpu.memory_space<vmem>>, vector<8x1024xf32>
      tpu.vector_store %arg5[%c0_16, %c0_17], %50 {strides = array<i32>} : memref<8x1024xf32, #tpu.memory_space<vmem>>, vector<8x1024xf32>,
    } else {
    }
    %3 = tpu.iota {dimensions = array<i32: 0>} : vector<128x256xi32>
    %c0 = arith.constant 0 : index
    %c0_1 = arith.constant 0 : index
    %4 = vector.load %arg4[%c0, %c0_1] : memref<8x256xi32, #tpu.memory_space<vmem>>, vector<1x256xi32>
    %5 = vector.broadcast %4 : vector<1x256xi32> to vector<128x256xi32>
    %6 = arith.cmpi eq, %3, %5 : vector<128x256xi32>
    %7 = arith.extui %6 : vector<128x256xi1> to vector<128x256xi32>
    %8 = arith.sitofp %7 : vector<128x256xi32> to vector<128x256xf32>
    %c1 = arith.constant 1 : index
    %c0_2 = arith.constant 0 : index
    %9 = vector.load %arg4[%c1, %c0_2] : memref<8x256xi32, #tpu.memory_space<vmem>>, vector<1x256xi32>
    %10 = vector.broadcast %9 : vector<1x256xi32> to vector<128x256xi32>
    %11 = arith.cmpi eq, %3, %10 : vector<128x256xi32>
    %12 = arith.extui %11 : vector<128x256xi1> to vector<128x256xi32>
    %13 = arith.sitofp %12 : vector<128x256xi32> to vector<128x256xf32>
    %c2 = arith.constant 2 : index
    %c0_3 = arith.constant 0 : index
    %14 = vector.load %arg4[%c2, %c0_3] : memref<8x256xi32, #tpu.memory_space<vmem>>, vector<1x256xi32>
    %15 = vector.broadcast %14 : vector<1x256xi32> to vector<128x256xi32>
    %16 = arith.cmpi eq, %3, %15 : vector<128x256xi32>
    %17 = arith.extui %16 : vector<128x256xi1> to vector<128x256xi32>
    %18 = arith.sitofp %17 : vector<128x256xi32> to vector<128x256xf32>
    %c3 = arith.constant 3 : index
    %c0_4 = arith.constant 0 : index
    %19 = vector.load %arg4[%c3, %c0_4] : memref<8x256xi32, #tpu.memory_space<vmem>>, vector<1x256xi32>
    %20 = vector.broadcast %19 : vector<1x256xi32> to vector<128x256xi32>
    %21 = arith.cmpi eq, %3, %20 : vector<128x256xi32>
    %22 = arith.extui %21 : vector<128x256xi1> to vector<128x256xi32>
    %23 = arith.sitofp %22 : vector<128x256xi32> to vector<128x256xf32>
    %c4 = arith.constant 4 : index
    %c0_5 = arith.constant 0 : index
    %24 = vector.load %arg4[%c4, %c0_5] : memref<8x256xi32, #tpu.memory_space<vmem>>, vector<1x256xi32>
    %25 = vector.broadcast %24 : vector<1x256xi32> to vector<128x256xi32>
    %26 = arith.cmpi eq, %3, %25 : vector<128x256xi32>
    %27 = arith.extui %26 : vector<128x256xi1> to vector<128x256xi32>
    %28 = arith.sitofp %27 : vector<128x256xi32> to vector<128x256xf32>
    %c5 = arith.constant 5 : index
    %c0_6 = arith.constant 0 : index
    %29 = vector.load %arg4[%c5, %c0_6] : memref<8x256xi32, #tpu.memory_space<vmem>>, vector<1x256xi32>
    %30 = vector.broadcast %29 : vector<1x256xi32> to vector<128x256xi32>
    %31 = arith.cmpi eq, %3, %30 : vector<128x256xi32>
    %32 = arith.extui %31 : vector<128x256xi1> to vector<128x256xi32>
    %33 = arith.sitofp %32 : vector<128x256xi32> to vector<128x256xf32>
    %c6 = arith.constant 6 : index
    %c0_7 = arith.constant 0 : index
    %34 = vector.load %arg4[%c6, %c0_7] : memref<8x256xi32, #tpu.memory_space<vmem>>, vector<1x256xi32>
    %35 = vector.broadcast %34 : vector<1x256xi32> to vector<128x256xi32>
    %36 = arith.cmpi eq, %3, %35 : vector<128x256xi32>
    %37 = arith.extui %36 : vector<128x256xi1> to vector<128x256xi32>
    %38 = arith.sitofp %37 : vector<128x256xi32> to vector<128x256xf32>
    %c7 = arith.constant 7 : index
    %c0_8 = arith.constant 0 : index
    %39 = vector.load %arg4[%c7, %c0_8] : memref<8x256xi32, #tpu.memory_space<vmem>>, vector<1x256xi32>
    %40 = vector.broadcast %39 : vector<1x256xi32> to vector<128x256xi32>
    %41 = arith.cmpi eq, %3, %40 : vector<128x256xi32>
    %42 = arith.extui %41 : vector<128x256xi1> to vector<128x256xi32>
    %43 = arith.sitofp %42 : vector<128x256xi32> to vector<128x256xf32>
    %44 = tpu.concatenate %8, %13, %18, %23, %28, %33, %38, %43 in 0 : vector<128x256xf32>, vector<128x256xf32>, vector<128x256xf32>, vector<128x256xf32>, vector<128x256xf32>, vector<128x256xf32>, vector<128x256xf32>, vector<128x256xf32> -> vector<1024x256xf32>
    %c0_9 = arith.constant 0 : index
    %c0_10 = arith.constant 0 : index
    %45 = vector.load %arg5[%c0_9, %c0_10] : memref<8x1024xf32, #tpu.memory_space<vmem>>, vector<8x1024xf32>
    %c0_11 = arith.constant 0 : index
    %c0_12 = arith.constant 0 : index
    %46 = vector.load %arg3[%c0_11, %c0_12] : memref<8x256xf32, #tpu.memory_space<vmem>>, vector<8x256xf32>
    %cst = arith.constant dense<0.000000e+00> : vector<8x1024xf32>
    %47 = tpu.matmul %46, %44, %cst {dimension_numbers = #tpu.dot_dimension_numbers<[1], [1], [0], [0], [0, 0, 1, 0], [], []>} : vector<8x256xf32>, vector<1024x256xf32>, vector<8x1024xf32> -> vector<8x1024xf32>
    %48 = arith.addf %45, %47 : vector<8x1024xf32>
    %c0_13 = arith.constant 0 : index
    %c0_14 = arith.constant 0 : index
    %49 = vector.load %arg5[%c0_13, %c0_14] : memref<8x1024xf32, #tpu.memory_space<vmem>>, vector<8x1024xf32>
    tpu.vector_store %arg5[%c0_13, %c0_14], %48 {strides = array<i32>} : memref<8x1024xf32, #tpu.memory_space<vmem>>, vector<8x1024xf32>,
    return
  }
  func.func @transform_0(%arg0: i32, %arg1: i32, %arg2: i32) -> (i32, i32) {
    %c0_i32 = arith.constant 0 : i32
    return %arg0, %arg2 : i32, i32
  }
  func.func @transform_1(%arg0: i32, %arg1: i32, %arg2: i32) -> (i32, i32) {
    %c0_i32 = arith.constant 0 : i32
    return %arg1, %arg2 : i32, i32
  }
  func.func @transform_2(%arg0: i32, %arg1: i32, %arg2: i32) -> (i32, i32) {
    %c0_i32 = arith.constant 0 : i32
    return %arg0, %arg1 : i32, i32
  }
}

</mosaic_0001>

<bundles_post_ra>
// kernel: tpu_custom_call.1
= control target key start
LH: loop header
LB: loop body
LE: loop exit
PB: predicated region body
PF: predicated region fallthrough
CT: control target
= control target key end

     0   :  { %7 = vsyncpa [#allocation3], 0  ;;  %s2730_s0 = inlined_call_operand.hbm [shape: f32[8,256], index: 0, kind: input, shape index: {}]   ;;  %s2731_s1 = inlined_call_operand.hbm [shape: s32[8,256], index: 1, kind: input, shape index: {}]   ;;  %s2732_s2 = inlined_call_operand.hbm [shape: f32[8,1024], index: 2, kind: output, shape index: {}]  }
   0x1   :  { %8 = vsyncpa [#allocation6], 0 }
   0x2   :  { %9 = vsyncpa [#allocation4], 0  ;;  %s1821_s9 = smov [#allocation2]   ;;  %s1822_s11 = smov [#allocation5]  }
   0x3   :  { %s16_s10 = sshll.u32 %s1821_s9, 4  ;;  %s26_s12 = sshll.u32 %s1822_s11, 4  ;;  %s17_s10 = int_to_ptr.vmem [resolvable:$true] %s16_s10  ;;  %s27_s12 = int_to_ptr.vmem [resolvable:$true] %s26_s12 }
   0x4   :  { %s1763_s13 = scalar_lea.vmem %s17_s10, 256  ;;  %p1768_p1 = scmp.lt.s32.totalorder %s17_s10, %s17_s10 }
   0x5   :  { %p1764_p0 = scmp.ne.s32.totalorder %s17_s10, %s1763_s13  ;;  %p1769_p2 = scmp.lt.s32.totalorder %s1763_s13, %s1763_s13 }
   0x7   :  { %p1770_p3 = por %p1769_p2, %p1768_p1 }
   0x9   :  { %p1771_p4 = pnand %p1770_p3, %p1764_p0 }
   0xb   :  { %1774 = shalt.err (!%p1771_p4)
}
   0xc   :  { %19 = dma.hbm_to_vmem [thread:$0]  %s2730_s0, 256, %s17_s10, [#allocation3]  }
   0xd   :  { %s1783_s16 = scalar_lea.vmem %s27_s12, 256  ;;  %p1788_p6 = scmp.lt.s32.totalorder %s27_s12, %s27_s12 }
   0xe   :  { %p1784_p5 = scmp.ne.s32.totalorder %s27_s12, %s1783_s16  ;;  %p1789_p7 = scmp.lt.s32.totalorder %s1783_s16, %s1783_s16 }
  0x10   :  { %p1790_p8 = por %p1789_p7, %p1788_p6 }
  0x12   :  { %p1791_p9 = pnand %p1790_p8, %p1784_p5 }
  0x14   :  { %1794 = shalt.err (!%p1791_p9)
}
  0x15   :  { %29 = dma.hbm_to_vmem [thread:$0]  %s2731_s1, 256, %s27_s12, [#allocation6]  }
  0x16   :  { %1815 = dma.done.wait [#allocation3], 256  }
  0x17   :  { %1816 = vsyncadd [#allocation3], 4294967040 }
  0x18   :  { %1817 = dma.done.wait [#allocation6], 256  }
  0x19   :  { %1818 = vsyncadd [#allocation6], 4294967040  ;;  %v48_v0 = vlaneseq  ;;  %v65_v6 = vld [vmem:[#allocation5] ss:$8 sm:$0x3]  ;;  %v1875_v13 = vld [vmem:[#allocation2 + $0x8] sm:$0xff] }
  0x1a   :  { %v277_v7 = vld [vmem:[#allocation5 + $0x2] ss:$8 sm:$0x3]  ;;  %986 = vmatprep.mubr.f32.mxu0 %v1875_v13  ;;  %v1823_v14 = vmov 1.0   ;;  %1057 = vmatprep.mubr.f32.mxu1 %v1875_v13  ;;  %v2327_v39 = vld [vmem:[#allocation2] sm:$0xff]  ;;  %s1824_s0 = smov [#allocation7]  }
  0x1b   :  { %v1846_v1 = vshrl.u32 %v48_v0, 7  ;;  %v171_v27 = vld [vmem:[#allocation5 + $0x1] ss:$8 sm:$0x3]  ;;  %s1228_s1 = sshll.u32 %s1824_s0, 4  ;;  %s1229_s1 = int_to_ptr.vmem [resolvable:$true] %s1228_s1 }
  0x1c   :  { %v383_v28 = vld [vmem:[#allocation5 + $0x3] ss:$8 sm:$0x3]  ;;  %v489_v33 = vld [vmem:[#allocation5 + $0x4] ss:$8 sm:$0x3]  ;;  %p1800_p11 = scmp.lt.s32.totalorder %s1229_s1, %s1229_s1 }
  0x1d   :  { %v1849_v2 = vsub.s32 1, %v1846_v1  ;;  %v1852_v3 = vsub.s32 0, %v1846_v1  ;;  %v1855_v4 = vadd.s32 120, %v1846_v1  ;;  %v1858_v5 = vadd.s32 112, %v1846_v1  ;;  %s1795_s19 = scalar_lea.vmem %s1229_s1, 1024 }
  0x1e   :  { %v1873_v12 = vadd.s32 104, %v1846_v1  ;;  %v1905_v15 = vadd.s32 96, %v1846_v1  ;;  %v1921_v16 = vadd.s32 88, %v1846_v1  ;;  %v1936_v17 = vadd.s32 80, %v1846_v1  ;;  %p1796_p10 = scmp.ne.s32.totalorder %s1229_s1, %s1795_s19  ;;  %p1801_p12 = scmp.lt.s32.totalorder %s1795_s19, %s1795_s19 }
  0x1f   :  { %v1861_v8 = vrot.slane %v65_v6, %v1849_v2  ;;  %v1864_v9 = vrot.slane %v277_v7, %v1849_v2  ;;  %v1867_v10 = vrot.slane %v65_v6, %v1852_v3  ;;  %v1870_v11 = vrot.slane %v277_v7, %v1852_v3  ;;  %v701_v34 = vld [vmem:[#allocation5 + $0x6] ss:$8 sm:$0x3]  ;;  %v595_v40 = vld [vmem:[#allocation5 + $0x5] ss:$8 sm:$0x3] }
  0x20   :  { %v1951_v18 = vadd.s32 72, %v1846_v1  ;;  %v1966_v19 = vadd.s32 64, %v1846_v1  ;;  %v1981_v20 = vadd.s32 56, %v1846_v1  ;;  %v1996_v21 = vadd.s32 48, %v1846_v1  ;;  %p1802_p13 = por %p1801_p12, %p1800_p11 }
  0x21   :  { %vm105_vm0 = vcmp.eq.s32.totalorder %v1855_v4, %v1861_v8  ;;  %vm317_vm1 = vcmp.eq.s32.totalorder %v1855_v4, %v1864_v9  ;;  %vm104_vm2 = vcmp.eq.s32.totalorder %v1855_v4, %v1867_v10  ;;  %vm316_vm3 = vcmp.eq.s32.totalorder %v1855_v4, %v1870_v11  ;;  %v807_v41 = vld [vmem:[#allocation5 + $0x7] ss:$8 sm:$0x3] }
  0x22   :  { %1494 = vmatprep.subr.msk.mxu0 %vm105_vm0, %v1823_v14  ;;  %1558 = vmatprep.subr.msk.mxu1 %vm317_vm1, %v1823_v14  ;;  %vm103_vm4 = vcmp.eq.s32.totalorder %v1858_v5, %v1861_v8  ;;  %vm315_vm5 = vcmp.eq.s32.totalorder %v1858_v5, %v1864_v9  ;;  %vm102_vm6 = vcmp.eq.s32.totalorder %v1858_v5, %v1867_v10  ;;  %v2011_v22 = vadd.s32 40, %v1846_v1  ;;  %p1803_p0 = pnand %p1802_p13, %p1796_p10 }
  0x23   :  { %1495 = vmatpush1.xpose.msk.msra.mxu0 %vm104_vm2, %v1823_v14  ;;  %1559 = vmatpush1.xpose.msk.msra.mxu1 %vm316_vm3, %v1823_v14  ;;  %vm314_vm7 = vcmp.eq.s32.totalorder %v1858_v5, %v1870_v11  ;;  %vm101_vm8 = vcmp.eq.s32.totalorder %v1873_v12, %v1861_v8  ;;  %vm313_vm9 = vcmp.eq.s32.totalorder %v1873_v12, %v1864_v9  ;;  %v2026_v23 = vadd.s32 32, %v1846_v1 }
  0x24   :  { %1496 = vmatprep.subr.msk.mxu0 %vm103_vm4, %v1823_v14  ;;  %1560 = vmatprep.subr.msk.mxu1 %vm315_vm5, %v1823_v14  ;;  %vm100_vm10 = vcmp.eq.s32.totalorder %v1873_v12, %v1867_v10  ;;  %vm312_vm11 = vcmp.eq.s32.totalorder %v1873_v12, %v1870_v11  ;;  %vm99_vm12 = vcmp.eq.s32.totalorder %v1905_v15, %v1861_v8  ;;  %v2041_v24 = vadd.s32 24, %v1846_v1 }
  0x25   :  { %vm311_vm13 = vcmp.eq.s32.totalorder %v1905_v15, %v1864_v9  ;;  %vm98_vm14 = vcmp.eq.s32.totalorder %v1905_v15, %v1867_v10  ;;  %vm310_vm15 = vcmp.eq.s32.totalorder %v1905_v15, %v1870_v11  ;;  %vm97_vm0 = vcmp.eq.s32.totalorder %v1921_v16, %v1861_v8 }
  0x26   :  { %vm309_vm1 = vcmp.eq.s32.totalorder %v1921_v16, %v1864_v9  ;;  %vm96_vm2 = vcmp.eq.s32.totalorder %v1921_v16, %v1867_v10  ;;  %vm308_vm3 = vcmp.eq.s32.totalorder %v1921_v16, %v1870_v11  ;;  %vm95_vm4 = vcmp.eq.s32.totalorder %v1936_v17, %v1861_v8 }
  0x27   :  { %1497 = vmatpush1.xpose.msk.msra.mxu0 %vm102_vm6, %v1823_v14  ;;  %1561 = vmatpush1.xpose.msk.msra.mxu1 %vm314_vm7, %v1823_v14  ;;  %vm307_vm5 = vcmp.eq.s32.totalorder %v1936_v17, %v1864_v9  ;;  %vm94_vm6 = vcmp.eq.s32.totalorder %v1936_v17, %v1867_v10  ;;  %vm306_vm7 = vcmp.eq.s32.totalorder %v1936_v17, %v1870_v11  ;;  %v2056_v25 = vadd.s32 16, %v1846_v1 }
  0x28   :  { %1498 = vmatprep.subr.msk.mxu0 %vm101_vm8, %v1823_v14  ;;  %1562 = vmatprep.subr.msk.mxu1 %vm313_vm9, %v1823_v14  ;;  %vm93_vm8 = vcmp.eq.s32.totalorder %v1951_v18, %v1861_v8  ;;  %vm305_vm9 = vcmp.eq.s32.totalorder %v1951_v18, %v1864_v9  ;;  %v2071_v26 = vadd.s32 8, %v1846_v1  ;;  %v2098_v29 = vrot.slane %v171_v27, %v1849_v2 }
  0x29   :  { %v2101_v30 = vrot.slane %v383_v28, %v1849_v2  ;;  %v2112_v31 = vrot.slane %v171_v27, %v1852_v3  ;;  %v2115_v32 = vrot.slane %v383_v28, %v1852_v3  ;;  %v2302_v35 = vrot.slane %v489_v33, %v1849_v2 }
  0x2a   :  { %v2305_v36 = vrot.slane %v701_v34, %v1849_v2  ;;  %v2310_v37 = vrot.slane %v489_v33, %v1852_v3  ;;  %v2319_v38 = vrot.slane %v701_v34, %v1852_v3  ;;  %v2512_v42 = vrot.slane %v595_v40, %v1849_v2 }
  0x2b   :  { %1499 = vmatpush1.xpose.msk.msra.mxu0 %vm100_vm10, %v1823_v14  ;;  %1563 = vmatpush1.xpose.msk.msra.mxu1 %vm312_vm11, %v1823_v14  ;;  %vm92_vm10 = vcmp.eq.s32.totalorder %v1951_v18, %v1867_v10  ;;  %vm304_vm11 = vcmp.eq.s32.totalorder %v1951_v18, %v1870_v11  ;;  %v2515_v43 = vrot.slane %v807_v41, %v1849_v2 }
  0x2c   :  { %1500 = vmatprep.subr.msk.mxu0 %vm99_vm12, %v1823_v14  ;;  %1564 = vmatprep.subr.msk.mxu1 %vm311_vm13, %v1823_v14  ;;  %vm91_vm12 = vcmp.eq.s32.totalorder %v1966_v19, %v1861_v8  ;;  %vm303_vm13 = vcmp.eq.s32.totalorder %v1966_v19, %v1864_v9  ;;  %v2526_v44 = vrot.slane %v595_v40, %v1852_v3 }
  0x2d   :  { %v2529_v45 = vrot.slane %v807_v41, %v1852_v3 }
  0x2f   :  { %1501 = vmatpush1.xpose.msk.msra.mxu0 %vm98_vm14, %v1823_v14  ;;  %1565 = vmatpush1.xpose.msk.msra.mxu1 %vm310_vm15, %v1823_v14  ;;  %vm90_vm14 = vcmp.eq.s32.totalorder %v1966_v19, %v1867_v10  ;;  %vm302_vm15 = vcmp.eq.s32.totalorder %v1966_v19, %v1870_v11 }
  0x30   :  { %1502 = vmatprep.subr.msk.mxu0 %vm97_vm0, %v1823_v14  ;;  %1566 = vmatprep.subr.msk.mxu1 %vm309_vm1, %v1823_v14  ;;  %vm89_vm0 = vcmp.eq.s32.totalorder %v1981_v20, %v1861_v8  ;;  %vm301_vm1 = vcmp.eq.s32.totalorder %v1981_v20, %v1864_v9 }
  0x33   :  { %1503 = vmatpush1.xpose.msk.msra.mxu0 %vm96_vm2, %v1823_v14  ;;  %1567 = vmatpush1.xpose.msk.msra.mxu1 %vm308_vm3, %v1823_v14  ;;  %vm88_vm2 = vcmp.eq.s32.totalorder %v1981_v20, %v1867_v10  ;;  %vm300_vm3 = vcmp.eq.s32.totalorder %v1981_v20, %v1870_v11 }
  0x34   :  { %1504 = vmatprep.subr.msk.mxu0 %vm95_vm4, %v1823_v14  ;;  %1568 = vmatprep.subr.msk.mxu1 %vm307_vm5, %v1823_v14  ;;  %vm87_vm4 = vcmp.eq.s32.totalorder %v1996_v21, %v1861_v8  ;;  %vm299_vm5 = vcmp.eq.s32.totalorder %v1996_v21, %v1864_v9 }
  0x37   :  { %1505 = vmatpush1.xpose.msk.msra.mxu0 %vm94_vm6, %v1823_v14  ;;  %1569 = vmatpush1.xpose.msk.msra.mxu1 %vm306_vm7, %v1823_v14  ;;  %vm86_vm6 = vcmp.eq.s32.totalorder %v1996_v21, %v1867_v10  ;;  %vm298_vm7 = vcmp.eq.s32.totalorder %v1996_v21, %v1870_v11 }
  0x38   :  { %1506 = vmatprep.subr.msk.mxu0 %vm93_vm8, %v1823_v14  ;;  %1570 = vmatprep.subr.msk.mxu1 %vm305_vm9, %v1823_v14  ;;  %vm85_vm8 = vcmp.eq.s32.totalorder %v2011_v22, %v1861_v8  ;;  %vm297_vm9 = vcmp.eq.s32.totalorder %v2011_v22, %v1864_v9 }
  0x3b   :  { %1507 = vmatpush1.xpose.msk.msra.mxu0 %vm92_vm10, %v1823_v14  ;;  %1571 = vmatpush1.xpose.msk.msra.mxu1 %vm304_vm11, %v1823_v14  ;;  %vm84_vm10 = vcmp.eq.s32.totalorder %v2011_v22, %v1867_v10  ;;  %vm296_vm11 = vcmp.eq.s32.totalorder %v2011_v22, %v1870_v11 }
  0x3c   :  { %1508 = vmatprep.subr.msk.mxu0 %vm91_vm12, %v1823_v14  ;;  %1572 = vmatprep.subr.msk.mxu1 %vm303_vm13, %v1823_v14  ;;  %vm83_vm12 = vcmp.eq.s32.totalorder %v2026_v23, %v1861_v8  ;;  %vm295_vm13 = vcmp.eq.s32.totalorder %v2026_v23, %v1864_v9 }
  0x3f   :  { %1509 = vmatpush1.xpose.msk.msra.mxu0 %vm90_vm14, %v1823_v14  ;;  %1573 = vmatpush1.xpose.msk.msra.mxu1 %vm302_vm15, %v1823_v14  ;;  %vm82_vm14 = vcmp.eq.s32.totalorder %v2026_v23, %v1867_v10  ;;  %vm294_vm15 = vcmp.eq.s32.totalorder %v2026_v23, %v1870_v11 }
  0x40   :  { %1510 = vmatprep.subr.msk.mxu0 %vm89_vm0, %v1823_v14  ;;  %1574 = vmatprep.subr.msk.mxu1 %vm301_vm1, %v1823_v14  ;;  %vm81_vm0 = vcmp.eq.s32.totalorder %v2041_v24, %v1861_v8  ;;  %vm293_vm1 = vcmp.eq.s32.totalorder %v2041_v24, %v1864_v9 }
  0x43   :  { %1511 = vmatpush1.xpose.msk.msra.mxu0 %vm88_vm2, %v1823_v14  ;;  %1575 = vmatpush1.xpose.msk.msra.mxu1 %vm300_vm3, %v1823_v14  ;;  %vm80_vm2 = vcmp.eq.s32.totalorder %v2041_v24, %v1867_v10  ;;  %vm292_vm3 = vcmp.eq.s32.totalorder %v2041_v24, %v1870_v11 }
  0x44   :  { %1512 = vmatprep.subr.msk.mxu0 %vm87_vm4, %v1823_v14  ;;  %1576 = vmatprep.subr.msk.mxu1 %vm299_vm5, %v1823_v14  ;;  %vm79_vm4 = vcmp.eq.s32.totalorder %v2056_v25, %v1861_v8  ;;  %vm291_vm5 = vcmp.eq.s32.totalorder %v2056_v25, %v1864_v9 }
  0x47   :  { %1513 = vmatpush1.xpose.msk.msra.mxu0 %vm86_vm6, %v1823_v14  ;;  %1577 = vmatpush1.xpose.msk.msra.mxu1 %vm298_vm7, %v1823_v14  ;;  %vm78_vm6 = vcmp.eq.s32.totalorder %v2056_v25, %v1867_v10  ;;  %vm290_vm7 = vcmp.eq.s32.totalorder %v2056_v25, %v1870_v11 }
  0x48   :  { %1514 = vmatprep.subr.msk.mxu0 %vm85_vm8, %v1823_v14  ;;  %1578 = vmatprep.subr.msk.mxu1 %vm297_vm9, %v1823_v14  ;;  %vm77_vm8 = vcmp.eq.s32.totalorder %v2071_v26, %v1861_v8  ;;  %vm289_vm9 = vcmp.eq.s32.totalorder %v2071_v26, %v1864_v9 }
  0x4b   :  { %1515 = vmatpush1.xpose.msk.msra.mxu0 %vm84_vm10, %v1823_v14  ;;  %1579 = vmatpush1.xpose.msk.msra.mxu1 %vm296_vm11, %v1823_v14  ;;  %vm76_vm10 = vcmp.eq.s32.totalorder %v2071_v26, %v1867_v10  ;;  %vm288_vm11 = vcmp.eq.s32.totalorder %v2071_v26, %v1870_v11 }
  0x4c   :  { %1516 = vmatprep.subr.msk.mxu0 %vm83_vm12, %v1823_v14  ;;  %1580 = vmatprep.subr.msk.mxu1 %vm295_vm13, %v1823_v14  ;;  %vm75_vm12 = vcmp.eq.s32.totalorder %v1846_v1, %v1861_v8  ;;  %vm287_vm13 = vcmp.eq.s32.totalorder %v1846_v1, %v1864_v9 }
  0x4f   :  { %1517 = vmatpush1.xpose.msk.msra.mxu0 %vm82_vm14, %v1823_v14  ;;  %1581 = vmatpush1.xpose.msk.msra.mxu1 %vm294_vm15, %v1823_v14  ;;  %vm74_vm14 = vcmp.eq.s32.totalorder %v1846_v1, %v1867_v10  ;;  %vm286_vm15 = vcmp.eq.s32.totalorder %v1846_v1, %v1870_v11 }
  0x50   :  { %1518 = vmatprep.subr.msk.mxu0 %vm81_vm0, %v1823_v14  ;;  %1582 = vmatprep.subr.msk.mxu1 %vm293_vm1, %v1823_v14  ;;  %vm211_vm0 = vcmp.eq.s32.totalorder %v1855_v4, %v2098_v29  ;;  %vm423_vm1 = vcmp.eq.s32.totalorder %v1855_v4, %v2101_v30 }
  0x53   :  { %1519 = vmatpush1.xpose.msk.msra.mxu0 %vm80_vm2, %v1823_v14  ;;  %1583 = vmatpush1.xpose.msk.msra.mxu1 %vm292_vm3, %v1823_v14  ;;  %vm210_vm2 = vcmp.eq.s32.totalorder %v1855_v4, %v2112_v31  ;;  %vm422_vm3 = vcmp.eq.s32.totalorder %v1855_v4, %v2115_v32 }
  0x54   :  { %1520 = vmatprep.subr.msk.mxu0 %vm79_vm4, %v1823_v14  ;;  %1584 = vmatprep.subr.msk.mxu1 %vm291_vm5, %v1823_v14  ;;  %vm209_vm4 = vcmp.eq.s32.totalorder %v1858_v5, %v2098_v29  ;;  %vm421_vm5 = vcmp.eq.s32.totalorder %v1858_v5, %v2101_v30 }
  0x57   :  { %1521 = vmatpush1.xpose.msk.msra.mxu0 %vm78_vm6, %v1823_v14  ;;  %1585 = vmatpush1.xpose.msk.msra.mxu1 %vm290_vm7, %v1823_v14  ;;  %vm208_vm6 = vcmp.eq.s32.totalorder %v1858_v5, %v2112_v31  ;;  %vm420_vm7 = vcmp.eq.s32.totalorder %v1858_v5, %v2115_v32 }
  0x58   :  { %1522 = vmatprep.subr.msk.mxu0 %vm77_vm8, %v1823_v14  ;;  %1586 = vmatprep.subr.msk.mxu1 %vm289_vm9, %v1823_v14  ;;  %vm207_vm8 = vcmp.eq.s32.totalorder %v1873_v12, %v2098_v29  ;;  %vm419_vm9 = vcmp.eq.s32.totalorder %v1873_v12, %v2101_v30 }
  0x5b   :  { %1523 = vmatpush1.xpose.msk.msra.mxu0 %vm76_vm10, %v1823_v14  ;;  %1587 = vmatpush1.xpose.msk.msra.mxu1 %vm288_vm11, %v1823_v14  ;;  %vm206_vm10 = vcmp.eq.s32.totalorder %v1873_v12, %v2112_v31  ;;  %vm418_vm11 = vcmp.eq.s32.totalorder %v1873_v12, %v2115_v32 }
  0x5c   :  { %1524 = vmatprep.subr.msk.mxu0 %vm75_vm12, %v1823_v14  ;;  %1588 = vmatprep.subr.msk.mxu1 %vm287_vm13, %v1823_v14  ;;  %vm205_vm12 = vcmp.eq.s32.totalorder %v1905_v15, %v2098_v29  ;;  %vm417_vm13 = vcmp.eq.s32.totalorder %v1905_v15, %v2101_v30 }
  0x5f   :  { %1525 = vmatpush1.xpose.msk.msra.mxu0 %vm74_vm14, %v1823_v14  ;;  %1589 = vmatpush1.xpose.msk.msra.mxu1 %vm286_vm15, %v1823_v14  ;;  %vm204_vm14 = vcmp.eq.s32.totalorder %v1905_v15, %v2112_v31  ;;  %vm416_vm15 = vcmp.eq.s32.totalorder %v1905_v15, %v2115_v32 }
  0x60   :  { %1526 = vmatprep.subr.msk.mxu0 %vm211_vm0, %v1823_v14  ;;  %1590 = vmatprep.subr.msk.mxu1 %vm423_vm1, %v1823_v14  ;;  %vm203_vm0 = vcmp.eq.s32.totalorder %v1921_v16, %v2098_v29  ;;  %vm415_vm1 = vcmp.eq.s32.totalorder %v1921_v16, %v2101_v30 }
  0x63   :  { %1527 = vmatpush2.xpose.msk.msra.mxu0 %vm210_vm2, %v1823_v14  ;;  %1591 = vmatpush2.xpose.msk.msra.mxu1 %vm422_vm3, %v1823_v14  ;;  %vm202_vm2 = vcmp.eq.s32.totalorder %v1921_v16, %v2112_v31  ;;  %vm414_vm3 = vcmp.eq.s32.totalorder %v1921_v16, %v2115_v32 }
  0x64   :  { %1528 = vmatprep.subr.msk.mxu0 %vm209_vm4, %v1823_v14  ;;  %1592 = vmatprep.subr.msk.mxu1 %vm421_vm5, %v1823_v14  ;;  %vm201_vm4 = vcmp.eq.s32.totalorder %v1936_v17, %v2098_v29  ;;  %vm413_vm5 = vcmp.eq.s32.totalorder %v1936_v17, %v2101_v30 }
  0x67   :  { %1529 = vmatpush2.xpose.msk.msra.mxu0 %vm208_vm6, %v1823_v14  ;;  %1593 = vmatpush2.xpose.msk.msra.mxu1 %vm420_vm7, %v1823_v14  ;;  %vm200_vm6 = vcmp.eq.s32.totalorder %v1936_v17, %v2112_v31  ;;  %vm412_vm7 = vcmp.eq.s32.totalorder %v1936_v17, %v2115_v32 }
  0x68   :  { %1530 = vmatprep.subr.msk.mxu0 %vm207_vm8, %v1823_v14  ;;  %1594 = vmatprep.subr.msk.mxu1 %vm419_vm9, %v1823_v14  ;;  %vm199_vm8 = vcmp.eq.s32.totalorder %v1951_v18, %v2098_v29  ;;  %vm411_vm9 = vcmp.eq.s32.totalorder %v1951_v18, %v2101_v30 }
  0x6b   :  { %1531 = vmatpush2.xpose.msk.msra.mxu0 %vm206_vm10, %v1823_v14  ;;  %1595 = vmatpush2.xpose.msk.msra.mxu1 %vm418_vm11, %v1823_v14  ;;  %vm198_vm10 = vcmp.eq.s32.totalorder %v1951_v18, %v2112_v31  ;;  %vm410_vm11 = vcmp.eq.s32.totalorder %v1951_v18, %v2115_v32 }
  0x6c   :  { %1532 = vmatprep.subr.msk.mxu0 %vm205_vm12, %v1823_v14  ;;  %1596 = vmatprep.subr.msk.mxu1 %vm417_vm13, %v1823_v14  ;;  %vm197_vm12 = vcmp.eq.s32.totalorder %v1966_v19, %v2098_v29  ;;  %vm409_vm13 = vcmp.eq.s32.totalorder %v1966_v19, %v2101_v30 }
  0x6f   :  { %1533 = vmatpush2.xpose.msk.msra.mxu0 %vm204_vm14, %v1823_v14  ;;  %1597 = vmatpush2.xpose.msk.msra.mxu1 %vm416_vm15, %v1823_v14  ;;  %vm196_vm14 = vcmp.eq.s32.totalorder %v1966_v19, %v2112_v31  ;;  %vm408_vm15 = vcmp.eq.s32.totalorder %v1966_v19, %v2115_v32 }
  0x70   :  { %1534 = vmatprep.subr.msk.mxu0 %vm203_vm0, %v1823_v14  ;;  %1598 = vmatprep.subr.msk.mxu1 %vm415_vm1, %v1823_v14  ;;  %vm195_vm0 = vcmp.eq.s32.totalorder %v1981_v20, %v2098_v29  ;;  %vm407_vm1 = vcmp.eq.s32.totalorder %v1981_v20, %v2101_v30 }
  0x73   :  { %1535 = vmatpush2.xpose.msk.msra.mxu0 %vm202_vm2, %v1823_v14  ;;  %1599 = vmatpush2.xpose.msk.msra.mxu1 %vm414_vm3, %v1823_v14  ;;  %vm194_vm2 = vcmp.eq.s32.totalorder %v1981_v20, %v2112_v31  ;;  %vm406_vm3 = vcmp.eq.s32.totalorder %v1981_v20, %v2115_v32 }
  0x74   :  { %1536 = vmatprep.subr.msk.mxu0 %vm201_vm4, %v1823_v14  ;;  %1600 = vmatprep.subr.msk.mxu1 %vm413_vm5, %v1823_v14  ;;  %vm193_vm4 = vcmp.eq.s32.totalorder %v1996_v21, %v2098_v29  ;;  %vm405_vm5 = vcmp.eq.s32.totalorder %v1996_v21, %v2101_v30 }
  0x77   :  { %1537 = vmatpush2.xpose.msk.msra.mxu0 %vm200_vm6, %v1823_v14  ;;  %1601 = vmatpush2.xpose.msk.msra.mxu1 %vm412_vm7, %v1823_v14  ;;  %vm192_vm6 = vcmp.eq.s32.totalorder %v1996_v21, %v2112_v31  ;;  %vm404_vm7 = vcmp.eq.s32.totalorder %v1996_v21, %v2115_v32 }
  0x78   :  { %1538 = vmatprep.subr.msk.mxu0 %vm199_vm8, %v1823_v14  ;;  %1602 = vmatprep.subr.msk.mxu1 %vm411_vm9, %v1823_v14  ;;  %vm191_vm8 = vcmp.eq.s32.totalorder %v2011_v22, %v2098_v29  ;;  %vm403_vm9 = vcmp.eq.s32.totalorder %v2011_v22, %v2101_v30 }
  0x7b   :  { %1539 = vmatpush2.xpose.msk.msra.mxu0 %vm198_vm10, %v1823_v14  ;;  %1603 = vmatpush2.xpose.msk.msra.mxu1 %vm410_vm11, %v1823_v14  ;;  %vm190_vm10 = vcmp.eq.s32.totalorder %v2011_v22, %v2112_v31  ;;  %vm402_vm11 = vcmp.eq.s32.totalorder %v2011_v22, %v2115_v32 }
  0x7c   :  { %1540 = vmatprep.subr.msk.mxu0 %vm197_vm12, %v1823_v14  ;;  %1604 = vmatprep.subr.msk.mxu1 %vm409_vm13, %v1823_v14  ;;  %vm189_vm12 = vcmp.eq.s32.totalorder %v2026_v23, %v2098_v29  ;;  %vm401_vm13 = vcmp.eq.s32.totalorder %v2026_v23, %v2101_v30 }
  0x7f   :  { %1541 = vmatpush2.xpose.msk.msra.mxu0 %vm196_vm14, %v1823_v14  ;;  %1605 = vmatpush2.xpose.msk.msra.mxu1 %vm408_vm15, %v1823_v14  ;;  %vm188_vm14 = vcmp.eq.s32.totalorder %v2026_v23, %v2112_v31  ;;  %vm400_vm15 = vcmp.eq.s32.totalorder %v2026_v23, %v2115_v32 }
  0x80   :  { %1542 = vmatprep.subr.msk.mxu0 %vm195_vm0, %v1823_v14  ;;  %1606 = vmatprep.subr.msk.mxu1 %vm407_vm1, %v1823_v14  ;;  %vm187_vm0 = vcmp.eq.s32.totalorder %v2041_v24, %v2098_v29  ;;  %vm399_vm1 = vcmp.eq.s32.totalorder %v2041_v24, %v2101_v30 }
  0x83   :  { %1543 = vmatpush2.xpose.msk.msra.mxu0 %vm194_vm2, %v1823_v14  ;;  %1607 = vmatpush2.xpose.msk.msra.mxu1 %vm406_vm3, %v1823_v14  ;;  %vm186_vm2 = vcmp.eq.s32.totalorder %v2041_v24, %v2112_v31  ;;  %vm398_vm3 = vcmp.eq.s32.totalorder %v2041_v24, %v2115_v32 }
  0x84   :  { %1544 = vmatprep.subr.msk.mxu0 %vm193_vm4, %v1823_v14  ;;  %1608 = vmatprep.subr.msk.mxu1 %vm405_vm5, %v1823_v14  ;;  %vm185_vm4 = vcmp.eq.s32.totalorder %v2056_v25, %v2098_v29  ;;  %vm397_vm5 = vcmp.eq.s32.totalorder %v2056_v25, %v2101_v30 }
  0x87   :  { %1545 = vmatpush2.xpose.msk.msra.mxu0 %vm192_vm6, %v1823_v14  ;;  %1609 = vmatpush2.xpose.msk.msra.mxu1 %vm404_vm7, %v1823_v14  ;;  %vm184_vm6 = vcmp.eq.s32.totalorder %v2056_v25, %v2112_v31  ;;  %vm396_vm7 = vcmp.eq.s32.totalorder %v2056_v25, %v2115_v32 }
  0x88   :  { %1546 = vmatprep.subr.msk.mxu0 %vm191_vm8, %v1823_v14  ;;  %1610 = vmatprep.subr.msk.mxu1 %vm403_vm9, %v1823_v14  ;;  %vm183_vm8 = vcmp.eq.s32.totalorder %v2071_v26, %v2098_v29  ;;  %vm395_vm9 = vcmp.eq.s32.totalorder %v2071_v26, %v2101_v30 }
  0x8b   :  { %1547 = vmatpush2.xpose.msk.msra.mxu0 %vm190_vm10, %v1823_v14  ;;  %1611 = vmatpush2.xpose.msk.msra.mxu1 %vm402_vm11, %v1823_v14  ;;  %vm182_vm10 = vcmp.eq.s32.totalorder %v2071_v26, %v2112_v31  ;;  %vm394_vm11 = vcmp.eq.s32.totalorder %v2071_v26, %v2115_v32 }
  0x8c   :  { %1548 = vmatprep.subr.msk.mxu0 %vm189_vm12, %v1823_v14  ;;  %1612 = vmatprep.subr.msk.mxu1 %vm401_vm13, %v1823_v14  ;;  %vm181_vm12 = vcmp.eq.s32.totalorder %v1846_v1, %v2098_v29  ;;  %vm393_vm13 = vcmp.eq.s32.totalorder %v1846_v1, %v2101_v30 }
  0x8f   :  { %1549 = vmatpush2.xpose.msk.msra.mxu0 %vm188_vm14, %v1823_v14  ;;  %1613 = vmatpush2.xpose.msk.msra.mxu1 %vm400_vm15, %v1823_v14  ;;  %vm180_vm14 = vcmp.eq.s32.totalorder %v1846_v1, %v2112_v31  ;;  %vm392_vm15 = vcmp.eq.s32.totalorder %v1846_v1, %v2115_v32 }
  0x90   :  { %1550 = vmatprep.subr.msk.mxu0 %vm187_vm0, %v1823_v14  ;;  %1614 = vmatprep.subr.msk.mxu1 %vm399_vm1, %v1823_v14  ;;  %vm529_vm0 = vcmp.eq.s32.totalorder %v1855_v4, %v2302_v35  ;;  %vm741_vm1 = vcmp.eq.s32.totalorder %v1855_v4, %v2305_v36 }
  0x93   :  { %1551 = vmatpush2.xpose.msk.msra.mxu0 %vm186_vm2, %v1823_v14  ;;  %1615 = vmatpush2.xpose.msk.msra.mxu1 %vm398_vm3, %v1823_v14  ;;  %vm528_vm2 = vcmp.eq.s32.totalorder %v1855_v4, %v2310_v37  ;;  %vm740_vm3 = vcmp.eq.s32.totalorder %v1855_v4, %v2319_v38 }
  0x94   :  { %1552 = vmatprep.subr.msk.mxu0 %vm185_vm4, %v1823_v14  ;;  %1616 = vmatprep.subr.msk.mxu1 %vm397_vm5, %v1823_v14  ;;  %vm527_vm4 = vcmp.eq.s32.totalorder %v1858_v5, %v2302_v35  ;;  %vm739_vm5 = vcmp.eq.s32.totalorder %v1858_v5, %v2305_v36 }
  0x97   :  { %1553 = vmatpush2.xpose.msk.msra.mxu0 %vm184_vm6, %v1823_v14  ;;  %1617 = vmatpush2.xpose.msk.msra.mxu1 %vm396_vm7, %v1823_v14  ;;  %vm526_vm6 = vcmp.eq.s32.totalorder %v1858_v5, %v2310_v37  ;;  %vm738_vm7 = vcmp.eq.s32.totalorder %v1858_v5, %v2319_v38 }
  0x98   :  { %1554 = vmatprep.subr.msk.mxu0 %vm183_vm8, %v1823_v14  ;;  %1618 = vmatprep.subr.msk.mxu1 %vm395_vm9, %v1823_v14  ;;  %vm525_vm8 = vcmp.eq.s32.totalorder %v1873_v12, %v2302_v35  ;;  %vm737_vm9 = vcmp.eq.s32.totalorder %v1873_v12, %v2305_v36 }
  0x9b   :  { %1555 = vmatpush2.xpose.msk.msra.mxu0 %vm182_vm10, %v1823_v14  ;;  %1619 = vmatpush2.xpose.msk.msra.mxu1 %vm394_vm11, %v1823_v14  ;;  %vm524_vm10 = vcmp.eq.s32.totalorder %v1873_v12, %v2310_v37  ;;  %vm736_vm11 = vcmp.eq.s32.totalorder %v1873_v12, %v2319_v38 }
  0x9c   :  { %1556 = vmatprep.subr.msk.mxu0 %vm181_vm12, %v1823_v14  ;;  %1620 = vmatprep.subr.msk.mxu1 %vm393_vm13, %v1823_v14  ;;  %vm523_vm12 = vcmp.eq.s32.totalorder %v1905_v15, %v2302_v35  ;;  %vm735_vm13 = vcmp.eq.s32.totalorder %v1905_v15, %v2305_v36 }
  0x9f   :  { %1557 = vmatpush2.xpose.msk.msra.mxu0 %vm180_vm14, %v1823_v14  ;;  %1621 = vmatpush2.xpose.msk.msra.mxu1 %vm392_vm15, %v1823_v14  ;;  %vm522_vm14 = vcmp.eq.s32.totalorder %v1905_v15, %v2310_v37  ;;  %vm734_vm15 = vcmp.eq.s32.totalorder %v1905_v15, %v2319_v38 }
  0xa0   :  { %1622 = vmatprep.subr.msk.mxu0 %vm529_vm0, %v1823_v14  ;;  %1686 = vmatprep.subr.msk.mxu1 %vm741_vm1, %v1823_v14  ;;  %vm521_vm0 = vcmp.eq.s32.totalorder %v1921_v16, %v2302_v35  ;;  %vm733_vm1 = vcmp.eq.s32.totalorder %v1921_v16, %v2305_v36 }
  0xa2   :  { %987 = vmatmul.mubr.f32.vlgmr.msra.gmra.mxu0 %v2327_v39  ;;  %1058 = vmatmul.mubr.f32.vlgmr.msra.gmra.mxu1 %v2327_v39 }
  0xa3   :  { %1623 = vmatpush1.xpose.msk.msra.mxu0 %vm528_vm2, %v1823_v14  ;;  %1687 = vmatpush1.xpose.msk.msra.mxu1 %vm740_vm3, %v1823_v14  ;;  %vm520_vm2 = vcmp.eq.s32.totalorder %v1921_v16, %v2310_v37  ;;  %vm732_vm3 = vcmp.eq.s32.totalorder %v1921_v16, %v2319_v38 }
  0xa4   :  { %1624 = vmatprep.subr.msk.mxu0 %vm527_vm4, %v1823_v14  ;;  %1688 = vmatprep.subr.msk.mxu1 %vm739_vm5, %v1823_v14  ;;  %vm519_vm4 = vcmp.eq.s32.totalorder %v1936_v17, %v2302_v35  ;;  %vm731_vm5 = vcmp.eq.s32.totalorder %v1936_v17, %v2305_v36 }
  0xa5   :  { %1128 = vmatprep.mubr.f32.mxu0 %v1875_v13  ;;  %1199 = vmatprep.mubr.f32.mxu1 %v1875_v13 }
  0xa7   :  { %1625 = vmatpush1.xpose.msk.msra.mxu0 %vm526_vm6, %v1823_v14  ;;  %1689 = vmatpush1.xpose.msk.msra.mxu1 %vm738_vm7, %v1823_v14  ;;  %vm518_vm6 = vcmp.eq.s32.totalorder %v1936_v17, %v2310_v37  ;;  %vm730_vm7 = vcmp.eq.s32.totalorder %v1936_v17, %v2319_v38 }
  0xa8   :  { %1626 = vmatprep.subr.msk.mxu0 %vm525_vm8, %v1823_v14  ;;  %1690 = vmatprep.subr.msk.mxu1 %vm737_vm9, %v1823_v14  ;;  %vm517_vm8 = vcmp.eq.s32.totalorder %v1951_v18, %v2302_v35  ;;  %vm729_vm9 = vcmp.eq.s32.totalorder %v1951_v18, %v2305_v36 }
  0xab   :  { %1627 = vmatpush1.xpose.msk.msra.mxu0 %vm524_vm10, %v1823_v14  ;;  %1691 = vmatpush1.xpose.msk.msra.mxu1 %vm736_vm11, %v1823_v14  ;;  %vm516_vm10 = vcmp.eq.s32.totalorder %v1951_v18, %v2310_v37  ;;  %vm728_vm11 = vcmp.eq.s32.totalorder %v1951_v18, %v2319_v38 }
  0xac   :  { %1628 = vmatprep.subr.msk.mxu0 %vm523_vm12, %v1823_v14  ;;  %1692 = vmatprep.subr.msk.mxu1 %vm735_vm13, %v1823_v14  ;;  %vm515_vm12 = vcmp.eq.s32.totalorder %v1966_v19, %v2302_v35  ;;  %vm727_vm13 = vcmp.eq.s32.totalorder %v1966_v19, %v2305_v36 }
  0xaf   :  { %1629 = vmatpush1.xpose.msk.msra.mxu0 %vm522_vm14, %v1823_v14  ;;  %1693 = vmatpush1.xpose.msk.msra.mxu1 %vm734_vm15, %v1823_v14  ;;  %vm514_vm14 = vcmp.eq.s32.totalorder %v1966_v19, %v2310_v37  ;;  %vm726_vm15 = vcmp.eq.s32.totalorder %v1966_v19, %v2319_v38 }
  0xb0   :  { %1630 = vmatprep.subr.msk.mxu0 %vm521_vm0, %v1823_v14  ;;  %1694 = vmatprep.subr.msk.mxu1 %vm733_vm1, %v1823_v14  ;;  %vm513_vm0 = vcmp.eq.s32.totalorder %v1981_v20, %v2302_v35  ;;  %vm725_vm1 = vcmp.eq.s32.totalorder %v1981_v20, %v2305_v36 }
  0xb3   :  { %1631 = vmatpush1.xpose.msk.msra.mxu0 %vm520_vm2, %v1823_v14  ;;  %1695 = vmatpush1.xpose.msk.msra.mxu1 %vm732_vm3, %v1823_v14  ;;  %vm512_vm2 = vcmp.eq.s32.totalorder %v1981_v20, %v2310_v37  ;;  %vm724_vm3 = vcmp.eq.s32.totalorder %v1981_v20, %v2319_v38 }
  0xb4   :  { %1632 = vmatprep.subr.msk.mxu0 %vm519_vm4, %v1823_v14  ;;  %1696 = vmatprep.subr.msk.mxu1 %vm731_vm5, %v1823_v14  ;;  %vm511_vm4 = vcmp.eq.s32.totalorder %v1996_v21, %v2302_v35  ;;  %vm723_vm5 = vcmp.eq.s32.totalorder %v1996_v21, %v2305_v36 }
  0xb7   :  { %1633 = vmatpush1.xpose.msk.msra.mxu0 %vm518_vm6, %v1823_v14  ;;  %1697 = vmatpush1.xpose.msk.msra.mxu1 %vm730_vm7, %v1823_v14  ;;  %vm510_vm6 = vcmp.eq.s32.totalorder %v1996_v21, %v2310_v37  ;;  %vm722_vm7 = vcmp.eq.s32.totalorder %v1996_v21, %v2319_v38 }
  0xb8   :  { %1634 = vmatprep.subr.msk.mxu0 %vm517_vm8, %v1823_v14  ;;  %1698 = vmatprep.subr.msk.mxu1 %vm729_vm9, %v1823_v14  ;;  %vm509_vm8 = vcmp.eq.s32.totalorder %v2011_v22, %v2302_v35  ;;  %vm721_vm9 = vcmp.eq.s32.totalorder %v2011_v22, %v2305_v36 }
  0xbb   :  { %1635 = vmatpush1.xpose.msk.msra.mxu0 %vm516_vm10, %v1823_v14  ;;  %1699 = vmatpush1.xpose.msk.msra.mxu1 %vm728_vm11, %v1823_v14  ;;  %vm508_vm10 = vcmp.eq.s32.totalorder %v2011_v22, %v2310_v37  ;;  %vm720_vm11 = vcmp.eq.s32.totalorder %v2011_v22, %v2319_v38 }
  0xbc   :  { %1636 = vmatprep.subr.msk.mxu0 %vm515_vm12, %v1823_v14  ;;  %1700 = vmatprep.subr.msk.mxu1 %vm727_vm13, %v1823_v14  ;;  %vm507_vm12 = vcmp.eq.s32.totalorder %v2026_v23, %v2302_v35  ;;  %vm719_vm13 = vcmp.eq.s32.totalorder %v2026_v23, %v2305_v36 }
  0xbf   :  { %1637 = vmatpush1.xpose.msk.msra.mxu0 %vm514_vm14, %v1823_v14  ;;  %1701 = vmatpush1.xpose.msk.msra.mxu1 %vm726_vm15, %v1823_v14  ;;  %vm506_vm14 = vcmp.eq.s32.totalorder %v2026_v23, %v2310_v37  ;;  %vm718_vm15 = vcmp.eq.s32.totalorder %v2026_v23, %v2319_v38 }
  0xc0   :  { %1638 = vmatprep.subr.msk.mxu0 %vm513_vm0, %v1823_v14  ;;  %1702 = vmatprep.subr.msk.mxu1 %vm725_vm1, %v1823_v14  ;;  %vm505_vm0 = vcmp.eq.s32.totalorder %v2041_v24, %v2302_v35  ;;  %vm717_vm1 = vcmp.eq.s32.totalorder %v2041_v24, %v2305_v36 }
  0xc3   :  { %1639 = vmatpush1.xpose.msk.msra.mxu0 %vm512_vm2, %v1823_v14  ;;  %1703 = vmatpush1.xpose.msk.msra.mxu1 %vm724_vm3, %v1823_v14  ;;  %vm504_vm2 = vcmp.eq.s32.totalorder %v2041_v24, %v2310_v37  ;;  %vm716_vm3 = vcmp.eq.s32.totalorder %v2041_v24, %v2319_v38 }
  0xc4   :  { %1640 = vmatprep.subr.msk.mxu0 %vm511_vm4, %v1823_v14  ;;  %1704 = vmatprep.subr.msk.mxu1 %vm723_vm5, %v1823_v14  ;;  %vm503_vm4 = vcmp.eq.s32.totalorder %v2056_v25, %v2302_v35  ;;  %vm715_vm5 = vcmp.eq.s32.totalorder %v2056_v25, %v2305_v36 }
  0xc7   :  { %1641 = vmatpush1.xpose.msk.msra.mxu0 %vm510_vm6, %v1823_v14  ;;  %1705 = vmatpush1.xpose.msk.msra.mxu1 %vm722_vm7, %v1823_v14  ;;  %vm502_vm6 = vcmp.eq.s32.totalorder %v2056_v25, %v2310_v37  ;;  %vm714_vm7 = vcmp.eq.s32.totalorder %v2056_v25, %v2319_v38 }
  0xc8   :  { %1642 = vmatprep.subr.msk.mxu0 %vm509_vm8, %v1823_v14  ;;  %1706 = vmatprep.subr.msk.mxu1 %vm721_vm9, %v1823_v14  ;;  %vm501_vm8 = vcmp.eq.s32.totalorder %v2071_v26, %v2302_v35  ;;  %vm713_vm9 = vcmp.eq.s32.totalorder %v2071_v26, %v2305_v36 }
  0xcb   :  { %1643 = vmatpush1.xpose.msk.msra.mxu0 %vm508_vm10, %v1823_v14  ;;  %1707 = vmatpush1.xpose.msk.msra.mxu1 %vm720_vm11, %v1823_v14  ;;  %vm500_vm10 = vcmp.eq.s32.totalorder %v2071_v26, %v2310_v37  ;;  %vm712_vm11 = vcmp.eq.s32.totalorder %v2071_v26, %v2319_v38 }
  0xcc   :  { %1644 = vmatprep.subr.msk.mxu0 %vm507_vm12, %v1823_v14  ;;  %1708 = vmatprep.subr.msk.mxu1 %vm719_vm13, %v1823_v14  ;;  %vm499_vm12 = vcmp.eq.s32.totalorder %v1846_v1, %v2302_v35  ;;  %vm711_vm13 = vcmp.eq.s32.totalorder %v1846_v1, %v2305_v36 }
  0xcf   :  { %1645 = vmatpush1.xpose.msk.msra.mxu0 %vm506_vm14, %v1823_v14  ;;  %1709 = vmatpush1.xpose.msk.msra.mxu1 %vm718_vm15, %v1823_v14  ;;  %vm498_vm14 = vcmp.eq.s32.totalorder %v1846_v1, %v2310_v37  ;;  %vm710_vm15 = vcmp.eq.s32.totalorder %v1846_v1, %v2319_v38 }
  0xd0   :  { %1646 = vmatprep.subr.msk.mxu0 %vm505_vm0, %v1823_v14  ;;  %1710 = vmatprep.subr.msk.mxu1 %vm717_vm1, %v1823_v14  ;;  %vm635_vm0 = vcmp.eq.s32.totalorder %v1855_v4, %v2512_v42  ;;  %vm847_vm1 = vcmp.eq.s32.totalorder %v1855_v4, %v2515_v43 }
  0xd3   :  { %1647 = vmatpush1.xpose.msk.msra.mxu0 %vm504_vm2, %v1823_v14  ;;  %1711 = vmatpush1.xpose.msk.msra.mxu1 %vm716_vm3, %v1823_v14  ;;  %vm634_vm2 = vcmp.eq.s32.totalorder %v1855_v4, %v2526_v44  ;;  %vm846_vm3 = vcmp.eq.s32.totalorder %v1855_v4, %v2529_v45 }
  0xd4   :  { %1648 = vmatprep.subr.msk.mxu0 %vm503_vm4, %v1823_v14  ;;  %1712 = vmatprep.subr.msk.mxu1 %vm715_vm5, %v1823_v14  ;;  %vm633_vm4 = vcmp.eq.s32.totalorder %v1858_v5, %v2512_v42  ;;  %vm845_vm5 = vcmp.eq.s32.totalorder %v1858_v5, %v2515_v43 }
  0xd7   :  { %1649 = vmatpush1.xpose.msk.msra.mxu0 %vm502_vm6, %v1823_v14  ;;  %1713 = vmatpush1.xpose.msk.msra.mxu1 %vm714_vm7, %v1823_v14  ;;  %vm632_vm6 = vcmp.eq.s32.totalorder %v1858_v5, %v2526_v44  ;;  %vm844_vm7 = vcmp.eq.s32.totalorder %v1858_v5, %v2529_v45 }
  0xd8   :  { %1650 = vmatprep.subr.msk.mxu0 %vm501_vm8, %v1823_v14  ;;  %1714 = vmatprep.subr.msk.mxu1 %vm713_vm9, %v1823_v14  ;;  %vm631_vm8 = vcmp.eq.s32.totalorder %v1873_v12, %v2512_v42  ;;  %vm843_vm9 = vcmp.eq.s32.totalorder %v1873_v12, %v2515_v43 }
  0xdb   :  { %1651 = vmatpush1.xpose.msk.msra.mxu0 %vm500_vm10, %v1823_v14  ;;  %1715 = vmatpush1.xpose.msk.msra.mxu1 %vm712_vm11, %v1823_v14  ;;  %vm630_vm10 = vcmp.eq.s32.totalorder %v1873_v12, %v2526_v44  ;;  %vm842_vm11 = vcmp.eq.s32.totalorder %v1873_v12, %v2529_v45 }
  0xdc   :  { %1652 = vmatprep.subr.msk.mxu0 %vm499_vm12, %v1823_v14  ;;  %1716 = vmatprep.subr.msk.mxu1 %vm711_vm13, %v1823_v14  ;;  %vm629_vm12 = vcmp.eq.s32.totalorder %v1905_v15, %v2512_v42  ;;  %vm841_vm13 = vcmp.eq.s32.totalorder %v1905_v15, %v2515_v43 }
  0xdf   :  { %1653 = vmatpush1.xpose.msk.msra.mxu0 %vm498_vm14, %v1823_v14  ;;  %1717 = vmatpush1.xpose.msk.msra.mxu1 %vm710_vm15, %v1823_v14  ;;  %vm628_vm14 = vcmp.eq.s32.totalorder %v1905_v15, %v2526_v44  ;;  %vm840_vm15 = vcmp.eq.s32.totalorder %v1905_v15, %v2529_v45 }
  0xe0   :  { %1654 = vmatprep.subr.msk.mxu0 %vm635_vm0, %v1823_v14  ;;  %1718 = vmatprep.subr.msk.mxu1 %vm847_vm1, %v1823_v14  ;;  %vm627_vm0 = vcmp.eq.s32.totalorder %v1921_v16, %v2512_v42  ;;  %vm839_vm1 = vcmp.eq.s32.totalorder %v1921_v16, %v2515_v43 }
  0xe3   :  { %1655 = vmatpush2.xpose.msk.msra.mxu0 %vm634_vm2, %v1823_v14  ;;  %1719 = vmatpush2.xpose.msk.msra.mxu1 %vm846_vm3, %v1823_v14  ;;  %vm626_vm2 = vcmp.eq.s32.totalorder %v1921_v16, %v2526_v44  ;;  %vm838_vm3 = vcmp.eq.s32.totalorder %v1921_v16, %v2529_v45 }
  0xe4   :  { %1656 = vmatprep.subr.msk.mxu0 %vm633_vm4, %v1823_v14  ;;  %1720 = vmatprep.subr.msk.mxu1 %vm845_vm5, %v1823_v14  ;;  %vm625_vm4 = vcmp.eq.s32.totalorder %v1936_v17, %v2512_v42  ;;  %vm837_vm5 = vcmp.eq.s32.totalorder %v1936_v17, %v2515_v43 }
  0xe7   :  { %1657 = vmatpush2.xpose.msk.msra.mxu0 %vm632_vm6, %v1823_v14  ;;  %1721 = vmatpush2.xpose.msk.msra.mxu1 %vm844_vm7, %v1823_v14  ;;  %vm624_vm6 = vcmp.eq.s32.totalorder %v1936_v17, %v2526_v44  ;;  %vm836_vm7 = vcmp.eq.s32.totalorder %v1936_v17, %v2529_v45 }
  0xe8   :  { %1658 = vmatprep.subr.msk.mxu0 %vm631_vm8, %v1823_v14  ;;  %1722 = vmatprep.subr.msk.mxu1 %vm843_vm9, %v1823_v14  ;;  %vm623_vm8 = vcmp.eq.s32.totalorder %v1951_v18, %v2512_v42  ;;  %vm835_vm9 = vcmp.eq.s32.totalorder %v1951_v18, %v2515_v43 }
  0xeb   :  { %1659 = vmatpush2.xpose.msk.msra.mxu0 %vm630_vm10, %v1823_v14  ;;  %1723 = vmatpush2.xpose.msk.msra.mxu1 %vm842_vm11, %v1823_v14  ;;  %vm622_vm10 = vcmp.eq.s32.totalorder %v1951_v18, %v2526_v44  ;;  %vm834_vm11 = vcmp.eq.s32.totalorder %v1951_v18, %v2529_v45 }
  0xec   :  { %1660 = vmatprep.subr.msk.mxu0 %vm629_vm12, %v1823_v14  ;;  %1724 = vmatprep.subr.msk.mxu1 %vm841_vm13, %v1823_v14  ;;  %vm621_vm12 = vcmp.eq.s32.totalorder %v1966_v19, %v2512_v42  ;;  %vm833_vm13 = vcmp.eq.s32.totalorder %v1966_v19, %v2515_v43 }
  0xef   :  { %1661 = vmatpush2.xpose.msk.msra.mxu0 %vm628_vm14, %v1823_v14  ;;  %1725 = vmatpush2.xpose.msk.msra.mxu1 %vm840_vm15, %v1823_v14  ;;  %vm620_vm14 = vcmp.eq.s32.totalorder %v1966_v19, %v2526_v44  ;;  %vm832_vm15 = vcmp.eq.s32.totalorder %v1966_v19, %v2529_v45 }
  0xf0   :  { %1662 = vmatprep.subr.msk.mxu0 %vm627_vm0, %v1823_v14  ;;  %1726 = vmatprep.subr.msk.mxu1 %vm839_vm1, %v1823_v14  ;;  %vm619_vm0 = vcmp.eq.s32.totalorder %v1981_v20, %v2512_v42  ;;  %vm831_vm1 = vcmp.eq.s32.totalorder %v1981_v20, %v2515_v43 }
  0xf3   :  { %1663 = vmatpush2.xpose.msk.msra.mxu0 %vm626_vm2, %v1823_v14  ;;  %1727 = vmatpush2.xpose.msk.msra.mxu1 %vm838_vm3, %v1823_v14  ;;  %vm618_vm2 = vcmp.eq.s32.totalorder %v1981_v20, %v2526_v44  ;;  %vm830_vm3 = vcmp.eq.s32.totalorder %v1981_v20, %v2529_v45 }
  0xf4   :  { %1664 = vmatprep.subr.msk.mxu0 %vm625_vm4, %v1823_v14  ;;  %1728 = vmatprep.subr.msk.mxu1 %vm837_vm5, %v1823_v14  ;;  %vm617_vm4 = vcmp.eq.s32.totalorder %v1996_v21, %v2512_v42  ;;  %vm829_vm5 = vcmp.eq.s32.totalorder %v1996_v21, %v2515_v43 }
  0xf7   :  { %1665 = vmatpush2.xpose.msk.msra.mxu0 %vm624_vm6, %v1823_v14  ;;  %1729 = vmatpush2.xpose.msk.msra.mxu1 %vm836_vm7, %v1823_v14  ;;  %vm616_vm6 = vcmp.eq.s32.totalorder %v1996_v21, %v2526_v44  ;;  %vm828_vm7 = vcmp.eq.s32.totalorder %v1996_v21, %v2529_v45 }
  0xf8   :  { %1666 = vmatprep.subr.msk.mxu0 %vm623_vm8, %v1823_v14  ;;  %1730 = vmatprep.subr.msk.mxu1 %vm835_vm9, %v1823_v14  ;;  %vm615_vm8 = vcmp.eq.s32.totalorder %v2011_v22, %v2512_v42  ;;  %vm827_vm9 = vcmp.eq.s32.totalorder %v2011_v22, %v2515_v43 }
  0xfb   :  { %1667 = vmatpush2.xpose.msk.msra.mxu0 %vm622_vm10, %v1823_v14  ;;  %1731 = vmatpush2.xpose.msk.msra.mxu1 %vm834_vm11, %v1823_v14  ;;  %vm614_vm10 = vcmp.eq.s32.totalorder %v2011_v22, %v2526_v44  ;;  %vm826_vm11 = vcmp.eq.s32.totalorder %v2011_v22, %v2529_v45 }
  0xfc   :  { %1668 = vmatprep.subr.msk.mxu0 %vm621_vm12, %v1823_v14  ;;  %1732 = vmatprep.subr.msk.mxu1 %vm833_vm13, %v1823_v14  ;;  %vm613_vm12 = vcmp.eq.s32.totalorder %v2026_v23, %v2512_v42  ;;  %vm825_vm13 = vcmp.eq.s32.totalorder %v2026_v23, %v2515_v43 }
  0xff   :  { %1669 = vmatpush2.xpose.msk.msra.mxu0 %vm620_vm14, %v1823_v14  ;;  %1733 = vmatpush2.xpose.msk.msra.mxu1 %vm832_vm15, %v1823_v14  ;;  %vm612_vm14 = vcmp.eq.s32.totalorder %v2026_v23, %v2526_v44  ;;  %vm824_vm15 = vcmp.eq.s32.totalorder %v2026_v23, %v2529_v45 }
 0x100   :  { %1670 = vmatprep.subr.msk.mxu0 %vm619_vm0, %v1823_v14  ;;  %1734 = vmatprep.subr.msk.mxu1 %vm831_vm1, %v1823_v14  ;;  %vm611_vm0 = vcmp.eq.s32.totalorder %v2041_v24, %v2512_v42  ;;  %vm823_vm1 = vcmp.eq.s32.totalorder %v2041_v24, %v2515_v43 }
 0x103   :  { %1671 = vmatpush2.xpose.msk.msra.mxu0 %vm618_vm2, %v1823_v14  ;;  %1735 = vmatpush2.xpose.msk.msra.mxu1 %vm830_vm3, %v1823_v14  ;;  %vm610_vm2 = vcmp.eq.s32.totalorder %v2041_v24, %v2526_v44  ;;  %vm822_vm3 = vcmp.eq.s32.totalorder %v2041_v24, %v2529_v45 }
 0x104   :  { %1672 = vmatprep.subr.msk.mxu0 %vm617_vm4, %v1823_v14  ;;  %1736 = vmatprep.subr.msk.mxu1 %vm829_vm5, %v1823_v14  ;;  %vm609_vm4 = vcmp.eq.s32.totalorder %v2056_v25, %v2512_v42  ;;  %vm821_vm5 = vcmp.eq.s32.totalorder %v2056_v25, %v2515_v43 }
 0x107   :  { %1673 = vmatpush2.xpose.msk.msra.mxu0 %vm616_vm6, %v1823_v14  ;;  %1737 = vmatpush2.xpose.msk.msra.mxu1 %vm828_vm7, %v1823_v14  ;;  %vm608_vm6 = vcmp.eq.s32.totalorder %v2056_v25, %v2526_v44  ;;  %vm820_vm7 = vcmp.eq.s32.totalorder %v2056_v25, %v2529_v45 }
 0x108   :  { %1674 = vmatprep.subr.msk.mxu0 %vm615_vm8, %v1823_v14  ;;  %1738 = vmatprep.subr.msk.mxu1 %vm827_vm9, %v1823_v14  ;;  %vm607_vm8 = vcmp.eq.s32.totalorder %v2071_v26, %v2512_v42  ;;  %vm819_vm9 = vcmp.eq.s32.totalorder %v2071_v26, %v2515_v43 }
 0x10b   :  { %1675 = vmatpush2.xpose.msk.msra.mxu0 %vm614_vm10, %v1823_v14  ;;  %1739 = vmatpush2.xpose.msk.msra.mxu1 %vm826_vm11, %v1823_v14  ;;  %vm606_vm10 = vcmp.eq.s32.totalorder %v2071_v26, %v2526_v44  ;;  %vm818_vm11 = vcmp.eq.s32.totalorder %v2071_v26, %v2529_v45 }
 0x10c   :  { %1676 = vmatprep.subr.msk.mxu0 %vm613_vm12, %v1823_v14  ;;  %1740 = vmatprep.subr.msk.mxu1 %vm825_vm13, %v1823_v14  ;;  %vm605_vm12 = vcmp.eq.s32.totalorder %v1846_v1, %v2512_v42  ;;  %vm817_vm13 = vcmp.eq.s32.totalorder %v1846_v1, %v2515_v43 }
 0x10f   :  { %1677 = vmatpush2.xpose.msk.msra.mxu0 %vm612_vm14, %v1823_v14  ;;  %1741 = vmatpush2.xpose.msk.msra.mxu1 %vm824_vm15, %v1823_v14  ;;  %vm604_vm14 = vcmp.eq.s32.totalorder %v1846_v1, %v2526_v44  ;;  %vm816_vm15 = vcmp.eq.s32.totalorder %v1846_v1, %v2529_v45 }
 0x110   :  { %1678 = vmatprep.subr.msk.mxu0 %vm611_vm0, %v1823_v14  ;;  %1742 = vmatprep.subr.msk.mxu1 %vm823_vm1, %v1823_v14 }
 0x113   :  { %1679 = vmatpush2.xpose.msk.msra.mxu0 %vm610_vm2, %v1823_v14  ;;  %1743 = vmatpush2.xpose.msk.msra.mxu1 %vm822_vm3, %v1823_v14 }
 0x114   :  { %1680 = vmatprep.subr.msk.mxu0 %vm609_vm4, %v1823_v14  ;;  %1744 = vmatprep.subr.msk.mxu1 %vm821_vm5, %v1823_v14 }
 0x117   :  { %1681 = vmatpush2.xpose.msk.msra.mxu0 %vm608_vm6, %v1823_v14  ;;  %1745 = vmatpush2.xpose.msk.msra.mxu1 %vm820_vm7, %v1823_v14 }
 0x118   :  { %1682 = vmatprep.subr.msk.mxu0 %vm607_vm8, %v1823_v14  ;;  %1746 = vmatprep.subr.msk.mxu1 %vm819_vm9, %v1823_v14 }
 0x11b   :  { %1683 = vmatpush2.xpose.msk.msra.mxu0 %vm606_vm10, %v1823_v14  ;;  %1747 = vmatpush2.xpose.msk.msra.mxu1 %vm818_vm11, %v1823_v14 }
 0x11c   :  { %1684 = vmatprep.subr.msk.mxu0 %vm605_vm12, %v1823_v14  ;;  %1748 = vmatprep.subr.msk.mxu1 %vm817_vm13, %v1823_v14 }
 0x11f   :  { %1685 = vmatpush2.xpose.msk.msra.mxu0 %vm604_vm14, %v1823_v14  ;;  %1749 = vmatpush2.xpose.msk.msra.mxu1 %vm816_vm15, %v1823_v14 }
 0x122   :  { %1129 = vmatmul.mubr.f32.vlgmr.msra.gmra.mxu0 %v2327_v39  ;;  %1200 = vmatmul.mubr.f32.vlgmr.msra.gmra.mxu1 %v2327_v39 }
 0x162   :  { %v988_v46 = vpop.f32.mrf.mxu0  ;;  %v1059_v47 = vpop.f32.mrf.mxu1 }
 0x163   :  { %1214 = vst [vmem:[#allocation7] sm:$0xff] %v988_v46  ;;  %1216 = vst [vmem:[#allocation7 + $0x10] sm:$0xff] %v1059_v47 }
 0x164   :  { %v990_v48 = vpop.f32.mrf.mxu0  ;;  %v1061_v49 = vpop.f32.mrf.mxu1 }
 0x165   :  { %1215 = vst [vmem:[#allocation7 + $0x8] sm:$0xff] %v990_v48  ;;  %1217 = vst [vmem:[#allocation7 + $0x18] sm:$0xff] %v1061_v49 }
 0x1e2   :  { %v1130_v50 = vpop.f32.mrf.mxu0  ;;  %v1201_v51 = vpop.f32.mrf.mxu1 }
 0x1e3   :  { %1218 = vst [vmem:[#allocation7 + $0x20] sm:$0xff] %v1130_v50  ;;  %1220 = vst [vmem:[#allocation7 + $0x30] sm:$0xff] %v1201_v51 }
 0x1e4   :  { %v1132_v52 = vpop.f32.mrf.mxu0  ;;  %v1203_v53 = vpop.f32.mrf.mxu1 }
 0x1e5   :  { %1219 = vst [vmem:[#allocation7 + $0x28] sm:$0xff] %v1132_v52  ;;  %1221 = vst [vmem:[#allocation7 + $0x38] sm:$0xff] %v1203_v53 }
 0x1e6   :  { %1806 = shalt.err (!%p1803_p0)
}
 0x1e7   :  { %1231 = dma.vmem_to_hbm [thread:$0]  %s1229_s1, 1024, %s2732_s2, [#allocation4]  }
 0x1e8   :  { %1819 = dma.done.wait [#allocation4], 1024  }
 0x1e9   :  { %1820 = vsyncadd [#allocation4], 4294966272 }
 0x1ea   :  { %1235 = vsyncpa [#allocation3], 1 }
 0x1eb   :  { %1236 = vsyncpa [#allocation6], 1 }
 0x1ec   :  { %1237 = vsyncpa [#allocation4], 1 }

</bundles_post_ra>
